<compile_context>
chip_gen: v7x
topology: tpu7x:2x2x1
jax: 0.10.0
libtpu: 0.0.40
codegen_flags: <defaults>
</compile_context>

<pallas_src>
import jax
import jax.numpy as jnp
from jax.experimental import pallas as pl
from jax.experimental.pallas import tpu as pltpu

# --- problem sizes (InvertedDoublePendulum-v4) -------------------------------
OBS_DIMS = 11      # env.observation_space.shape[0]
ACT_DIMS = 1       # env.action_space.shape[0]
H1 = 16
H2 = 32


def _round_up(n, m):
    return ((n + m - 1) // m) * m


def policy_kernel(xT_ref, w1T_ref, b1_ref, w2T_ref, b2_ref, whT_ref, bh_ref,
                  out_ref):
    """Feature-major tile: batch lives on the lane axis (last dim)."""
    xT = xT_ref[...]                                              # [OBS, tb]

    # shared_net: Linear -> tanh -> Linear -> tanh (all lane-dense over batch)
    h1 = jnp.tanh(
        jnp.dot(w1T_ref[...], xT, preferred_element_type=jnp.float32)
        + b1_ref[...])                                            # [H1, tb]
    h2 = jnp.tanh(
        jnp.dot(w2T_ref[...], h1, preferred_element_type=jnp.float32)
        + b2_ref[...])                                            # [H2, tb]

    # Fused heads: rows [0:ACT) = mean pre-activation, rows [ACT:2*ACT) = stddev.
    heads = (jnp.dot(whT_ref[...], h2, preferred_element_type=jnp.float32)
             + bh_ref[...])                                       # [2*ACT, tb]

    # Mean rows pass through; stddev rows get a stable softplus
    # log(1 + exp(x)) = logaddexp(x, 0).  Two lane-dense row stores.
    out_ref[:ACT_DIMS, :] = heads[:ACT_DIMS, :]
    out_ref[ACT_DIMS:, :] = jnp.logaddexp(heads[ACT_DIMS:, :], 0.0)


def policy_network_forward(x, params, *, batch_tile=4096):
    """x: [batch, OBS_DIMS]. Returns (means, stddevs): each [batch, ACT_DIMS] f32."""
    w1, b1, w2, b2, wm, bm, ws, bs = params
    batch = x.shape[0]

    # Pre-transpose the (tiny) weights once: kernel works feature-major.
    w1T = w1.T                                            # [H1, OBS]
    b1T = b1.reshape(1, H1).T                             # [H1, 1]
    w2T = w2.T                                            # [H2, H1]
    b2T = b2.reshape(1, H2).T                             # [H2, 1]
    whT = jnp.concatenate([wm.T, ws.T], axis=0)           # [2*ACT, H2]
    bhT = jnp.concatenate([bm.reshape(1, ACT_DIMS).T,
                           bs.reshape(1, ACT_DIMS).T], axis=0)  # [2*ACT, 1]

    # Batch tile: lane-aligned (multiple of 128).  Big tiles amortize the
    # ~0.35 us grid-step overhead; once there's enough work, cap the tile so
    # the parallel grid has >= 2 steps for v7x's two TensorCores.
    tb = min(batch_tile, _round_up(batch, 128))
    if batch > 256 and _round_up(batch, tb) // tb < 2:
        tb = max(128, _round_up(tb // 2, 128))
    b_pad = _round_up(batch, tb)

    # Fold cast + pad into the single wrapper transpose (one relayout pass).
    xT = x.astype(jnp.float32).T                          # [OBS, batch]  (x.float())
    if b_pad != batch:
        xT = jnp.pad(xT, ((0, 0), (0, b_pad - batch)))

    resident = lambda a: pl.BlockSpec(a.shape, lambda i: (0,) * a.ndim)

    out = pl.pallas_call(
        policy_kernel,
        out_shape=jax.ShapeDtypeStruct((2 * ACT_DIMS, b_pad), jnp.float32),
        grid=(b_pad // tb,),
        in_specs=[
            pl.BlockSpec((OBS_DIMS, tb), lambda i: (0, i)),   # xT: tiled over batch
            resident(w1T), resident(b1T),                     # weights: VMEM-resident
            resident(w2T), resident(b2T),
            resident(whT), resident(bhT),
        ],
        out_specs=pl.BlockSpec((2 * ACT_DIMS, tb), lambda i: (0, i)),
        compiler_params=pltpu.CompilerParams(
            dimension_semantics=("parallel",)),               # megacore / v7x 2-TC
    )(xT, w1T, b1T, w2T, b2T, whT, bhT)

    means = out[:ACT_DIMS, :batch].T                      # [batch, ACT]
    stddevs = out[ACT_DIMS:, :batch].T                    # [batch, ACT]
    return means, stddevs


def init_params(key):
    """Deterministic init mimicking PyTorch Linear default U(-1/sqrt(fan_in), +)."""
    def linear(k, fan_in, fan_out):
        kw, kb = jax.random.split(k)
        bound = 1.0 / jnp.sqrt(jnp.float32(fan_in))
        w = jax.random.uniform(kw, (fan_in, fan_out), jnp.float32, -bound, bound)
        b = jax.random.uniform(kb, (1, fan_out), jnp.float32, -bound, bound)
        return w, b

    k1, k2, k3, k4 = jax.random.split(key, 4)
    w1, b1 = linear(k1, OBS_DIMS, H1)
    w2, b2 = linear(k2, H1, H2)
    wm, bm = linear(k3, H2, ACT_DIMS)
    ws, bs = linear(k4, H2, ACT_DIMS)
    return (w1, b1, w2, b2, wm, bm, ws, bs)


def reference_forward(x, params):
    """Pure-JAX reference for correctness checking."""
    w1, b1, w2, b2, wm, bm, ws, bs = params
    x = x.astype(jnp.float32)
    h1 = jnp.tanh(x @ w1 + b1)
    h2 = jnp.tanh(h1 @ w2 + b2)
    means = h2 @ wm + bm
    stddevs = jax.nn.softplus(h2 @ ws + bs)   # stable log(1 + exp(.))
    return means, stddevs


def _check(x, params):
    m, s = jax.block_until_ready(policy_network_forward(x, params))
    rm, rs = reference_forward(x, params)
    assert m.shape == rm.shape and s.shape == rs.shape
    assert jnp.allclose(m, rm, atol=1e-5, rtol=1e-5)
    assert jnp.allclose(s, rs, atol=1e-5, rtol=1e-5)
    assert bool(jnp.all(s > 0))


if __name__ == "__main__":
    key = jax.random.PRNGKey(0)
    k_params, k_x1, k_x2, k_x3 = jax.random.split(key, 4)

    params = init_params(k_params)

    # Small batch (pads 4 -> 128 lanes internally).
    _check(jax.random.normal(k_x1, (4, OBS_DIMS), jnp.float32), params)

    # Non-multiple-of-128 batch exercising the pad/slice path.
    _check(jax.random.normal(k_x2, (37, OBS_DIMS), jnp.float32), params)

    # Larger batch exercising the multi-step (>=2 grid iterations) path.
    _check(jax.random.normal(k_x3, (640, OBS_DIMS), jnp.float32), params)

    print("KERNEL_OK")
</pallas_src>

<mosaic_0001>
module attributes {stable_mosaic.version = 11 : i64} {
  func.func @policy_kernel(%arg0: i32, %arg1: memref<11x128xf32, #tpu.memory_space<vmem>>, %arg2: memref<16x11xf32, #tpu.memory_space<vmem>>, %arg3: memref<16x1xf32, #tpu.memory_space<vmem>>, %arg4: memref<32x16xf32, #tpu.memory_space<vmem>>, %arg5: memref<32x1xf32, #tpu.memory_space<vmem>>, %arg6: memref<2x32xf32, #tpu.memory_space<vmem>>, %arg7: memref<2x1xf32, #tpu.memory_space<vmem>>, %arg8: memref<2x128xf32, #tpu.memory_space<vmem>>) attributes {dimension_semantics = [#tpu.dimension_semantics<parallel>], iteration_bounds = array<i64: 1>, scalar_prefetch = 0 : i64, scratch_operands = 0 : i64, tpu.core_type = #tpu.core_type<tc>, window_params = [{transform_indices = @transform_0, window_bounds = array<i64: 11, 128>}, {pipeline_mode = #tpu.pipeline_mode<synchronous>, transform_indices = @transform_1, window_bounds = array<i64: 16, 11>}, {pipeline_mode = #tpu.pipeline_mode<synchronous>, transform_indices = @transform_2, window_bounds = array<i64: 16, 1>}, {pipeline_mode = #tpu.pipeline_mode<synchronous>, transform_indices = @transform_3, window_bounds = array<i64: 32, 16>}, {pipeline_mode = #tpu.pipeline_mode<synchronous>, transform_indices = @transform_4, window_bounds = array<i64: 32, 1>}, {pipeline_mode = #tpu.pipeline_mode<synchronous>, transform_indices = @transform_5, window_bounds = array<i64: 2, 32>}, {pipeline_mode = #tpu.pipeline_mode<synchronous>, transform_indices = @transform_6, window_bounds = array<i64: 2, 1>}, {transform_indices = @transform_7, window_bounds = array<i64: 2, 128>}]} {
    %c0 = arith.constant 0 : index
    %c0_0 = arith.constant 0 : index
    %0 = vector.load %arg1[%c0, %c0_0] : memref<11x128xf32, #tpu.memory_space<vmem>>, vector<11x128xf32>
    %c0_1 = arith.constant 0 : index
    %c0_2 = arith.constant 0 : index
    %1 = vector.load %arg2[%c0_1, %c0_2] : memref<16x11xf32, #tpu.memory_space<vmem>>, vector<16x11xf32>
    %cst = arith.constant dense<0.000000e+00> : vector<16x128xf32>
    %2 = tpu.matmul %1, %0, %cst {dimension_numbers = #tpu.dot_dimension_numbers<[1], [0], [0], [1], [0, 0, 1, 1], [], []>} : vector<16x11xf32>, vector<11x128xf32>, vector<16x128xf32> -> vector<16x128xf32>
    %c0_3 = arith.constant 0 : index
    %c0_4 = arith.constant 0 : index
    %3 = vector.load %arg3[%c0_3, %c0_4] : memref<16x1xf32, #tpu.memory_space<vmem>>, vector<16x1xf32>
    %4 = vector.broadcast %3 : vector<16x1xf32> to vector<16x128xf32>
    %5 = arith.addf %2, %4 : vector<16x128xf32>
    %6 = math.tanh %5 : vector<16x128xf32>
    %c0_5 = arith.constant 0 : index
    %c0_6 = arith.constant 0 : index
    %7 = vector.load %arg4[%c0_5, %c0_6] : memref<32x16xf32, #tpu.memory_space<vmem>>, vector<32x16xf32>
    %cst_7 = arith.constant dense<0.000000e+00> : vector<32x128xf32>
    %8 = tpu.matmul %7, %6, %cst_7 {dimension_numbers = #tpu.dot_dimension_numbers<[1], [0], [0], [1], [0, 0, 1, 1], [], []>} : vector<32x16xf32>, vector<16x128xf32>, vector<32x128xf32> -> vector<32x128xf32>
    %c0_8 = arith.constant 0 : index
    %c0_9 = arith.constant 0 : index
    %9 = vector.load %arg5[%c0_8, %c0_9] : memref<32x1xf32, #tpu.memory_space<vmem>>, vector<32x1xf32>
    %10 = vector.broadcast %9 : vector<32x1xf32> to vector<32x128xf32>
    %11 = arith.addf %8, %10 : vector<32x128xf32>
    %12 = math.tanh %11 : vector<32x128xf32>
    %c0_10 = arith.constant 0 : index
    %c0_11 = arith.constant 0 : index
    %13 = vector.load %arg6[%c0_10, %c0_11] : memref<2x32xf32, #tpu.memory_space<vmem>>, vector<2x32xf32>
    %cst_12 = arith.constant dense<0.000000e+00> : vector<2x128xf32>
    %14 = tpu.matmul %13, %12, %cst_12 {dimension_numbers = #tpu.dot_dimension_numbers<[1], [0], [0], [1], [0, 0, 1, 1], [], []>} : vector<2x32xf32>, vector<32x128xf32>, vector<2x128xf32> -> vector<2x128xf32>
    %c0_13 = arith.constant 0 : index
    %c0_14 = arith.constant 0 : index
    %15 = vector.load %arg7[%c0_13, %c0_14] : memref<2x1xf32, #tpu.memory_space<vmem>>, vector<2x1xf32>
    %16 = vector.broadcast %15 : vector<2x1xf32> to vector<2x128xf32>
    %17 = arith.addf %14, %16 : vector<2x128xf32>
    %18 = vector.extract_strided_slice %17 {offsets = [0, 0], sizes = [1, 128], strides = [1, 1]} : vector<2x128xf32> to vector<1x128xf32>
    %c0_15 = arith.constant 0 : index
    %c0_16 = arith.constant 0 : index
    %19 = vector.load %arg8[%c0_15, %c0_16] : memref<2x128xf32, #tpu.memory_space<vmem>>, vector<1x128xf32>
    tpu.vector_store %arg8[%c0_15, %c0_16], %18 {strides = array<i32>} : memref<2x128xf32, #tpu.memory_space<vmem>>, vector<1x128xf32>,
    %20 = vector.extract_strided_slice %17 {offsets = [1, 0], sizes = [1, 128], strides = [1, 1]} : vector<2x128xf32> to vector<1x128xf32>
    %cst_17 = arith.constant 0.000000e+00 : f32
    %21 = vector.broadcast %cst_17 : f32 to vector<1x128xf32>
    %22 = arith.maximumf %20, %21 : vector<1x128xf32>
    %23 = vector.broadcast %cst_17 : f32 to vector<1x128xf32>
    %24 = arith.subf %20, %23 : vector<1x128xf32>
    %25 = arith.cmpf one, %24, %24 : vector<1x128xf32>
    %26 = vector.broadcast %cst_17 : f32 to vector<1x128xf32>
    %27 = arith.addf %20, %26 : vector<1x128xf32>
    %28 = math.absf %24 : vector<1x128xf32>
    %cst_18 = arith.constant 0.000000e+00 : f32
    %29 = vector.broadcast %cst_18 : f32 to vector<1x128xf32>
    %30 = arith.subf %29, %28 : vector<1x128xf32>
    %31 = math.exp %30 : vector<1x128xf32>
    %32 = math.log1p %31 : vector<1x128xf32>
    %33 = arith.addf %22, %32 : vector<1x128xf32>
    %34 = arith.select %25, %27, %33 : vector<1x128xi1>, vector<1x128xf32>
    %c1 = arith.constant 1 : index
    %c0_19 = arith.constant 0 : index
    %35 = vector.load %arg8[%c1, %c0_19] : memref<2x128xf32, #tpu.memory_space<vmem>>, vector<1x128xf32>
    tpu.vector_store %arg8[%c1, %c0_19], %34 {strides = array<i32>} : memref<2x128xf32, #tpu.memory_space<vmem>>, vector<1x128xf32>,
    return
  }
  func.func @transform_0(%arg0: i32) -> (i32, i32) {
    %c0_i32 = arith.constant 0 : i32
    %c0_i32_0 = arith.constant 0 : i32
    return %c0_i32, %arg0 : i32, i32
  }
  func.func @transform_1(%arg0: i32) -> (i32, i32) {
    %c0_i32 = arith.constant 0 : i32
    %c0_i32_0 = arith.constant 0 : i32
    %c0_i32_1 = arith.constant 0 : i32
    return %c0_i32, %c0_i32_0 : i32, i32
  }
  func.func @transform_2(%arg0: i32) -> (i32, i32) {
    %c0_i32 = arith.constant 0 : i32
    %c0_i32_0 = arith.constant 0 : i32
    %c0_i32_1 = arith.constant 0 : i32
    return %c0_i32, %c0_i32_0 : i32, i32
  }
  func.func @transform_3(%arg0: i32) -> (i32, i32) {
    %c0_i32 = arith.constant 0 : i32
    %c0_i32_0 = arith.constant 0 : i32
    %c0_i32_1 = arith.constant 0 : i32
    return %c0_i32, %c0_i32_0 : i32, i32
  }
  func.func @transform_4(%arg0: i32) -> (i32, i32) {
    %c0_i32 = arith.constant 0 : i32
    %c0_i32_0 = arith.constant 0 : i32
    %c0_i32_1 = arith.constant 0 : i32
    return %c0_i32, %c0_i32_0 : i32, i32
  }
  func.func @transform_5(%arg0: i32) -> (i32, i32) {
    %c0_i32 = arith.constant 0 : i32
    %c0_i32_0 = arith.constant 0 : i32
    %c0_i32_1 = arith.constant 0 : i32
    return %c0_i32, %c0_i32_0 : i32, i32
  }
  func.func @transform_6(%arg0: i32) -> (i32, i32) {
    %c0_i32 = arith.constant 0 : i32
    %c0_i32_0 = arith.constant 0 : i32
    %c0_i32_1 = arith.constant 0 : i32
    return %c0_i32, %c0_i32_0 : i32, i32
  }
  func.func @transform_7(%arg0: i32) -> (i32, i32) {
    %c0_i32 = arith.constant 0 : i32
    %c0_i32_0 = arith.constant 0 : i32
    return %c0_i32, %arg0 : i32, i32
  }
}

</mosaic_0001>

<bundles_post_ra>
// kernel: tpu_custom_call.1
= control target key start
LH: loop header
LB: loop body
LE: loop exit
PB: predicated region body
PF: predicated region fallthrough
CT: control target
= control target key end

     0   :  { %vm50_vm0 = vcmask 1042432   ;;  %vm491_vm1 = vmmov 1   ;;  %vm43_vm3 = vcmask 89088   ;;  %v492_v5 = vmov 0   ;;  %s601_s0 = inlined_call_operand.vmem [shape: f32[11,128], index: 0, kind: input, shape index: {}]   ;;  %s602_s1 = inlined_call_operand.vmem [shape: f32[16,11], index: 1, kind: input, shape index: {}]   ;;  %s603_s2 = inlined_call_operand.vmem [shape: f32[16,1], index: 2, kind: input, shape index: {}]   ;;  %s604_s3 = inlined_call_operand.vmem [shape: f32[32,16], index: 3, kind: input, shape index: {}]   ;;  %s605_s4 = inlined_call_operand.vmem [shape: f32[32,1], index: 4, kind: input, shape index: {}]   ;;  %s606_s5 = inlined_call_operand.vmem [shape: f32[2,32], index: 5, kind: input, shape index: {}]   ;;  %s607_s6 = inlined_call_operand.vmem [shape: f32[2,1], index: 6, kind: input, shape index: {}]   ;;  %s608_s7 = inlined_call_operand.hbm [shape: f32[2,128], index: 7, kind: output, shape index: {}]  }
   0x1   :  { %v27_v0 = vld [vmem:[%s601_s0] sm:$0xff]  ;;  %v28_v1 = vld [vmem:[%s601_s0 + $0x8] sm:$0x7]  ;;  %vm428_vm2 = vmpackc.low %vm50_vm0, %vm491_vm1  ;;  %449 = vset.pattern.permute.xlu0 %v492_v5 }
   0x2   :  { %v29_v2 = vld [vmem:[%s602_s1] sm:$0xff]  ;;  %v427_v3 = vpack.c.bf16 %v28_v1, %v27_v0 }
   0x3   :  { %v31_v4 = vld [vmem:[%s603_s2] sm:$0xff]  ;;  %403 = vmatprep.mubr.msk.f32.mxu0 %vm43_vm3, %v29_v2 }
   0x4   :  { %429 = vmatprep.subr.msk.bf16.mxu0 %vm428_vm2, %v427_v3  ;;  %35 = vperm.xlu0 %449, %v31_v4  }
   0x5   :  { %12 = vsyncpa [#allocation3], 0  ;;  %432 = vmatpush3.bf16.msk.msra.mxu0 %vm428_vm2, %v427_v3  ;;  %v30_v6 = vld [vmem:[%s602_s1 + $0x8] sm:$0xff]  ;;  %450 = vset.pattern.permute.xlu1 %v492_v5  ;;  %v137_v8 = vld [vmem:[%s605_s4 + $0x10] sm:$0xff]  ;;  %vm159_vm4 = vcmask 130048   ;;  %v493_v26 = vmov 0.0|0.0  }
   0x6   :  { %v32_v7 = vld [vmem:[%s603_s2 + $0x8] sm:$0xff]  ;;  %v262_v9 = vld [vmem:[%s607_s6] sm:$0x3]  ;;  %v138_v13 = vld [vmem:[%s605_s4 + $0x18] sm:$0xff]  ;;  %437 = vmatprep.subr.bf16.mxu0 %v493_v26  ;;  %vm494_vm5 = vmmov 0   ;;  %v495_v27 = vmov 0.0  }
   0x7   :  { %v131_v10 = vld [vmem:[%s604_s3] sm:$0xff]  ;;  %v136_v12 = vld [vmem:[%s605_s4 + $0x8] sm:$0xff]  ;;  %v133_v24 = vld [vmem:[%s604_s3 + $0x10] sm:$0xff]  ;;  %vm268_vm6 = vcmask 261120  }
   0x8   :  { %404 = vmatmul.mubr.msk.f32.vlgmr.msra.gmra.mrb[0].mxu0 %vm43_vm3, %v30_v6  ;;  %40 = vperm.xlu0 %449, %v32_v7   ;;  %v135_v11 = vld [vmem:[%s605_s4] sm:$0xff]  ;;  %v132_v23 = vld [vmem:[%s604_s3 + $0x8] sm:$0xff]  ;;  %v134_v25 = vld [vmem:[%s604_s3 + $0x18] sm:$0xff] }
   0x9   :  { %410 = vmatprep.mubr.msk.f32.mxu1 %vm159_vm4, %v131_v10  ;;  %141 = vperm.xlu1 %450, %v135_v11   ;;  %v261_v46 = vld [vmem:[%s606_s5] sm:$0x3]  ;;  %s496_s5 = smov [#allocation2]  }
   0xa   :  { %424 = vmatprep.mubr.msk.f32.mxu0 %vm494_vm5, %v495_v27  ;;  %s368_s27 = sshll.u32 %s496_s5, 4  ;;  %s369_s27 = int_to_ptr.vmem [resolvable:$true] %s368_s27 }
   0xb   :  { %s467_s28 = scalar_lea.vmem %s369_s27, 32  ;;  %p472_p1 = scmp.lt.s32.totalorder %s369_s27, %s369_s27 }
   0xc   :  { %151 = vperm.xlu0 %449, %v137_v8   ;;  %p468_p0 = scmp.ne.s32.totalorder %s369_s27, %s467_s28  ;;  %p473_p2 = scmp.lt.s32.totalorder %s467_s28, %s467_s28 }
   0xd   :  { %146 = vperm.xlu1 %450, %v136_v12  }
   0xe   :  { %p474_p3 = por %p473_p2, %p472_p1 }
  0x10   :  { %265 = vperm.xlu0 %449, %v262_v9   ;;  %p475_p4 = pnand %p474_p3, %p468_p0 }
  0x11   :  { %156 = vperm.xlu1 %450, %v138_v13  }
  0x83   :  { %v36_v14 = vpop.permute.xlu0 %35 }
  0x87   :  { %v41_v15 = vpop.permute.xlu0 %40 }
  0x88   :  { %v142_v28 = vpop.permute.xlu1 %141 }
  0x8b   :  { %v152_v36 = vpop.permute.xlu0 %151 }
  0x8c   :  { %v147_v29 = vpop.permute.xlu1 %146 }
  0x8f   :  { %v266_v47 = vpop.permute.xlu0 %265 }
  0x90   :  { %v157_v34 = vpop.permute.xlu1 %156 }
  0xdb   :  { %v405_v16 = vpop.f32.mrb[0].mxu0 }
  0xdc   :  { %v126_v17 = vadd.f32 %v405_v16, %v41_v15  ;;  %v120_v18 = vpop.f32.mrb[1].mxu0 }
  0xdd   :  { %v121_v19 = vadd.f32 %v120_v18, %v36_v14 }
  0xde   :  { %451 = vtanh.f32 %v126_v17 }
  0xdf   :  { %453 = vtanh.f32 %v121_v19 }
  0xe8   :  { %v452_v20 = vpop.eup %451 }
  0xe9   :  { %v454_v21 = vpop.eup %453 }
  0xea   :  { %v433_v22 = vpack.c.bf16 %v452_v20, %v454_v21 }
  0xec   :  { %434 = vmatprep.subr.bf16.mxu1 %v433_v22 }
  0xed   :  { %436 = vmatpush3.bf16.msra.mxu1 %v433_v22 }
  0xf0   :  { %411 = vmatmul.mubr.msk.f32.vlgmr.msra.gmra.mrb[0].mxu1 %vm159_vm4, %v132_v23 }
  0xf1   :  { %413 = vmatprep.mubr.msk.f32.mxu1 %vm159_vm4, %v133_v24 }
  0xf4   :  { %414 = vmatmul.mubr.msk.f32.gmra.mrb[2].mxu1 %vm159_vm4, %v134_v25 }
 0x1c3   :  { %v412_v30 = vpop.f32.mrb[0].mxu1 }
 0x1c4   :  { %v244_v31 = vadd.f32 %v412_v30, %v147_v29  ;;  %v238_v32 = vpop.f32.mrb[1].mxu1 }
 0x1c5   :  { %v239_v33 = vadd.f32 %v238_v32, %v142_v28 }
 0x1c6   :  { %455 = vtanh.f32 %v244_v31 }
 0x1c7   :  { %457 = vtanh.f32 %v239_v33  ;;  %v415_v35 = vpop.f32.mrb[2].mxu1 }
 0x1c8   :  { %v254_v37 = vadd.f32 %v415_v35, %v157_v34  ;;  %v248_v38 = vpop.f32.mrb[3].mxu1 }
 0x1c9   :  { %v249_v39 = vadd.f32 %v248_v38, %v152_v36 }
 0x1ca   :  { %459 = vtanh.f32 %v254_v37 }
 0x1cb   :  { %461 = vtanh.f32 %v249_v39 }
 0x1d0   :  { %v456_v40 = vpop.eup %455 }
 0x1d1   :  { %v458_v41 = vpop.eup %457 }
 0x1d2   :  { %v438_v42 = vpack.c.bf16 %v456_v40, %v458_v41 }
 0x1d4   :  { %v460_v43 = vpop.eup %459  ;;  %439 = vmatpush3.bf16.msra.mxu0 %v438_v42 }
 0x1d5   :  { %v462_v44 = vpop.eup %461  ;;  %440 = vmatprep.subr.bf16.mxu0 %v493_v26 }
 0x1d6   :  { %v441_v45 = vpack.c.bf16 %v460_v43, %v462_v44 }
 0x1d8   :  { %442 = vmatpush3.bf16.msra.mxu0 %v441_v45 }
 0x1db   :  { %425 = vmatmul.mubr.msk.f32.vlgmr.msra.gmra.mrb[2].mxu0 %vm268_vm6, %v261_v46 }
 0x2ae   :  { %v338_v48 = vpop.f32.mrb[2].mxu0 }
 0x2af   :  { %v339_v49 = vadd.f32 %v338_v48, %v266_v47  ;;  %v426_v50 = vpop.f32.mrb[3].mxu0 }
 0x2b1   :  { %v346_v51 = vand.u32 2147483647, %v339_v49  ;;  %342 = vst [vmem:[#allocation2] sm:$0x1] %v339_v49  ;;  %v343_v62 = vmax.f32 %v339_v49, 0.0  ;;  %vm344_vm8 = vcmp.ne.f32.partialorder %v339_v49, %v339_v49 }
 0x2b3   :  { %v347_v52 = vsub.f32 0.0, %v346_v51 }
 0x2b5   :  { %v348_v53 = vmul.f32 1.442695, %v347_v52 }
 0x2b7   :  { %463 = vpow2.f32 %v348_v53 }
 0x2c1   :  { %v464_v54 = vpop.eup %463 }
 0x2c2   :  { %v350_v55 = vadd.f32 1.0, %v464_v54  ;;  %v353_v56 = vmul.f32 -0.5, %v464_v54  ;;  %v356_v58 = vand.u32 2147483647, %v464_v54 }
 0x2c4   :  { %465 = vlog2.f32 %v350_v55  ;;  %v354_v57 = vadd.f32 1.0, %v353_v56  ;;  %vm357_vm7 = vcmp.lt.f32.partialorder %v356_v58, 0.0004427343 }
 0x2c6   :  { %v355_v61 = vmul.f32 %v464_v54, %v354_v57 }
 0x2ce   :  { %v466_v59 = vpop.eup %465 }
 0x2cf   :  { %v352_v60 = vmul.f32 0.6931472, %v466_v59 }
 0x2d1   :  { %v358_v63 = vsel %vm357_vm7, %v355_v61, %v352_v60 }
 0x2d2   :  { %v359_v0 = vadd.f32 %v358_v63, %v343_v62 }
 0x2d4   :  { %v360_v1 = vsel %vm344_vm8, %v339_v49, %v359_v0 }
 0x2d5   :  { %361 = vst [vmem:[#allocation2] sm:$0x2] %v360_v1 }
 0x2d6   :  { %478 = shalt.err (!%p475_p4)
}
 0x2d7   :  { %s479_s8 = scalar_lea.hbm %s608_s7, 32 }
 0x2d8   :  { %p480_p5 = scmp.ne.s32.totalorder %s608_s7, %s479_s8  ;;  %p483_p6 = scmp.lt.u32.totalorder %s479_s8, %s608_s7 }
 0x2da   :  { %p485_p7 = pnand %p483_p6, %p480_p5 }
 0x2dc   :  { %488 = shalt.err (!%p485_p7)
}
 0x2dd   :  { %371 = dma.vmem_to_hbm [thread:$0]  %s369_s27, 32, %s608_s7, [#allocation3]  }
 0x2de   :  { %489 = dma.done.wait [#allocation3], 32  }
 0x2df   :  { %490 = vsyncadd [#allocation3], 4294967264 }
 0x2e0   :  { %375 = vsyncpa [#allocation3], 1 }

</bundles_post_ra>
